<compile_context>
chip_gen: v7x
topology: tpu7x:2x2x1
jax: 0.10.0
libtpu: 0.0.40
codegen_flags: <defaults>
</compile_context>

<pallas_src>
import math
from functools import partial

import jax
import jax.numpy as jnp
from jax import lax
from jax.experimental import pallas as pl
from jax.experimental.pallas import tpu as pltpu


# ---------------------------------------------------------------------------
# Helpers
# ---------------------------------------------------------------------------
def _const_spec(shape, index_map):
    """BlockSpec for a block whose index never changes -> single-buffer it."""
    try:
        return pl.BlockSpec(shape, index_map, pipeline_mode=pl.Buffered(1))
    except (TypeError, AttributeError):   # older jax without pipeline_mode
        return pl.BlockSpec(shape, index_map)


def _pick_tile(size, candidates):
    for t in candidates:
        if t <= size and size % t == 0:
            return t
    # TODO(synk): pad/mask ragged sequence lengths instead of falling back to
    # a full-size tile (only matters for long prime-ish S).
    return size


def _vmem_limit(estimate_bytes):
    # At least the 32 MiB default, at most 64 MiB so the same setting is safe
    # on v7x (64 MiB physical) as well as v5e/v6e.
    return int(min(max(2 * estimate_bytes, 32 * 1024 * 1024), 64 * 1024 * 1024))


# ---------------------------------------------------------------------------
# Pass 1: fused Q/K/V projections  (x @ W + b, weights pre-transposed [in,out])
# ---------------------------------------------------------------------------
def _qkv_proj_kernel(x_ref, wq_ref, bq_ref, wk_ref, bk_ref, wv_ref, bv_ref,
                     q_ref, k_ref, v_ref):
    x = x_ref[0]                                              # [ts, H] f32
    # Q / K stay f32: they feed the floor-divided logits.
    q_ref[0] = (jnp.dot(x, wq_ref[...], preferred_element_type=jnp.float32)
                + bq_ref[...])
    k_ref[0] = (jnp.dot(x, wk_ref[...], preferred_element_type=jnp.float32)
                + bk_ref[...])
    # V is post-floor -> bf16 inputs, f32 accumulation, bf16 output.
    v = jnp.dot(x.astype(jnp.bfloat16), wv_ref[...],
                preferred_element_type=jnp.float32) + bv_ref[...]
    v_ref[0] = v.astype(jnp.bfloat16)


# ---------------------------------------------------------------------------
# Pass 2: flash-style GQA attention + output projection
# ---------------------------------------------------------------------------
def _attn_kernel(q_ref, k_ref, v_ref, wo_ref, bo_ref, o_ref,
                 m_sc, l_sc, acc_sc, ctx_sc, *,
                 num_heads, num_kv_heads, head_dim):
    group = num_heads // num_kv_heads
    gd = group * head_dim                        # q / ctx columns per KV group
    inv_scale = 1.0 / math.sqrt(head_dim)        # compile-time constant

    kt = pl.program_id(2)

    q = q_ref[0]                                 # [tq, H]       f32
    k = k_ref[0]                                 # [tk, kv_dim]  f32
    v = v_ref[0]                                 # [tk, kv_dim]  bf16
    tq = q.shape[0]

    @pl.when(kt == 0)
    def _():
        m_sc[...] = jnp.full_like(m_sc, -jnp.inf)
        l_sc[...] = jnp.zeros_like(l_sc)
        acc_sc[...] = jnp.zeros_like(acc_sc)

    for g in range(num_kv_heads):                # static, small trip count
        # Stack this KV-group's `group` query heads along the row dimension:
        # [tq, group*hd] -> [tq*group, hd]  (pure row-major reshape).
        qg = q[:, g * gd:(g + 1) * gd].reshape(tq * group, head_dim)
        kg = k[:, g * head_dim:(g + 1) * head_dim]            # [tk, hd] f32
        vg = v[:, g * head_dim:(g + 1) * head_dim]            # [tk, hd] bf16

        # Q @ K^T with the transpose folded into the contraction.
        s = lax.dot_general(qg, kg, (((1,), (1,)), ((), ())),
                            preferred_element_type=jnp.float32)
        # PyTorch uses `//` (floor division) on the logits.
        s = jnp.floor(s * inv_scale)                           # [tq*group, tk]

        m_prev = m_sc[g]                                       # [tq*group, 1]
        m_new = jnp.maximum(m_prev, jnp.max(s, axis=-1, keepdims=True))
        alpha = jnp.exp(m_prev - m_new)
        e = jnp.exp(s - m_new)
        l_sc[g] = alpha * l_sc[g] + jnp.sum(e, axis=-1, keepdims=True)
        # Deferred normalization: accumulate unnormalized exp @ V on the MXU
        # (bf16 operands, f32 accumulation); normalize once at the end.
        acc_sc[g] = alpha * acc_sc[g] + jnp.dot(
            e.astype(jnp.bfloat16), vg, preferred_element_type=jnp.float32)
        m_sc[g] = m_new

    @pl.when(kt == pl.num_programs(2) - 1)
    def _():
        # Un-stack each group back to [tq, group*hd] and pack the full context
        # [tq, H] into VMEM scratch (bf16), then one large Wo GEMM.
        for g in range(num_kv_heads):
            ctx = acc_sc[g] * pl.reciprocal(l_sc[g], approx=True)
            ctx_sc[:, g * gd:(g + 1) * gd] = (
                ctx.reshape(tq, gd).astype(jnp.bfloat16))
        out = jnp.dot(ctx_sc[...], wo_ref[...],
                      preferred_element_type=jnp.float32) + bo_ref[...]
        o_ref[0] = out


# ---------------------------------------------------------------------------
# Wrapper
# ---------------------------------------------------------------------------
def gqa_forward(x, params, *, num_heads, num_kv_heads,
                q_tile=None, kv_tile=None, s_tile=None):
    """x: [B, S, H] float32.  params: [in,out] weights (torch W.T), [1,out] biases."""
    B, S, H = x.shape
    assert H % num_heads == 0 and num_heads % num_kv_heads == 0
    head_dim = H // num_heads
    group = num_heads // num_kv_heads
    kv_dim = num_kv_heads * head_dim
    f32, bf16 = 4, 2

    # --- per-generation aware tile sizes -----------------------------------
    try:
        vmem_cap = pltpu.get_tpu_info().vmem_capacity_bytes
    except Exception:
        vmem_cap = 128 * 1024 * 1024
    q_cap = 128 if vmem_cap <= 64 * 1024 * 1024 else 256      # v7x: 64 MiB VMEM

    if s_tile is None:
        s_tile = _pick_tile(S, (512, 256, 128, 64, 32, 16, 8))
    if q_tile is None:
        q_tile = _pick_tile(S, tuple(t for t in (256, 128, 64, 32, 16, 8)
                                     if t <= q_cap))
    if kv_tile is None:
        kv_tile = _pick_tile(S, (512, 256, 128, 64, 32, 16, 8))
    assert S % s_tile == 0 and S % q_tile == 0 and S % kv_tile == 0

    wq, bq = params["wq"], params["bq"]
    wk, bk = params["wk"], params["bk"]
    wv, bv = params["wv"].astype(jnp.bfloat16), params["bv"]
    wo, bo = params["wo"].astype(jnp.bfloat16), params["bo"]

    # ----------------------------------------------------------------------
    # Pass 1: Q / K / V projections (computed exactly once per token).
    # ----------------------------------------------------------------------
    proj_bytes = (2 * s_tile * H * f32                             # x tile
                  + H * H * f32 + H * f32                          # Wq, bq
                  + H * kv_dim * f32 + kv_dim * f32                # Wk, bk
                  + H * kv_dim * bf16 + kv_dim * f32               # Wv, bv
                  + 2 * s_tile * (H * f32 + kv_dim * f32 + kv_dim * bf16))

    q, k, v = pl.pallas_call(
        _qkv_proj_kernel,
        out_shape=(jax.ShapeDtypeStruct((B, S, H), jnp.float32),
                   jax.ShapeDtypeStruct((B, S, kv_dim), jnp.float32),
                   jax.ShapeDtypeStruct((B, S, kv_dim), jnp.bfloat16)),
        grid_spec=pltpu.PrefetchScalarGridSpec(
            num_scalar_prefetch=0,
            grid=(B, S // s_tile),
            in_specs=[
                pl.BlockSpec((1, s_tile, H), lambda b, t: (b, t, 0)),
                _const_spec((H, H), lambda b, t: (0, 0)),
                _const_spec((1, H), lambda b, t: (0, 0)),
                _const_spec((H, kv_dim), lambda b, t: (0, 0)),
                _const_spec((1, kv_dim), lambda b, t: (0, 0)),
                _const_spec((H, kv_dim), lambda b, t: (0, 0)),
                _const_spec((1, kv_dim), lambda b, t: (0, 0)),
            ],
            out_specs=(
                pl.BlockSpec((1, s_tile, H), lambda b, t: (b, t, 0)),
                pl.BlockSpec((1, s_tile, kv_dim), lambda b, t: (b, t, 0)),
                pl.BlockSpec((1, s_tile, kv_dim), lambda b, t: (b, t, 0)),
            )),
        compiler_params=pltpu.CompilerParams(
            dimension_semantics=("parallel", "parallel"),
            vmem_limit_bytes=_vmem_limit(proj_bytes)),
    )(x, wq, bq, wk, bk, wv, bv)

    # ----------------------------------------------------------------------
    # Pass 2: flash-style attention + output projection.
    # ----------------------------------------------------------------------
    attn_bytes = (2 * q_tile * H * f32                             # q tile
                  + 2 * kv_tile * kv_dim * (f32 + bf16)            # k, v tiles
                  + H * H * bf16 + H * f32                         # Wo, bo
                  + 2 * q_tile * H * f32                           # out tile
                  + num_heads * q_tile * (2 + head_dim) * f32      # m, l, acc
                  + q_tile * H * bf16                              # ctx scratch
                  + 4 * q_tile * group * kv_tile * f32)            # score temps

    kernel = partial(_attn_kernel, num_heads=num_heads,
                     num_kv_heads=num_kv_heads, head_dim=head_dim)

    return pl.pallas_call(
        kernel,
        out_shape=jax.ShapeDtypeStruct((B, S, H), jnp.float32),
        grid_spec=pltpu.PrefetchScalarGridSpec(
            num_scalar_prefetch=0,
            grid=(B, S // q_tile, S // kv_tile),
            in_specs=[
                pl.BlockSpec((1, q_tile, H), lambda b, i, j: (b, i, 0)),
                pl.BlockSpec((1, kv_tile, kv_dim), lambda b, i, j: (b, j, 0)),
                pl.BlockSpec((1, kv_tile, kv_dim), lambda b, i, j: (b, j, 0)),
                _const_spec((H, H), lambda b, i, j: (0, 0)),
                _const_spec((1, H), lambda b, i, j: (0, 0)),
            ],
            out_specs=pl.BlockSpec((1, q_tile, H), lambda b, i, j: (b, i, 0)),
            scratch_shapes=[
                pltpu.VMEM((num_kv_heads, q_tile * group, 1), jnp.float32),         # m
                pltpu.VMEM((num_kv_heads, q_tile * group, 1), jnp.float32),         # l
                pltpu.VMEM((num_kv_heads, q_tile * group, head_dim), jnp.float32),  # acc
                pltpu.VMEM((q_tile, H), jnp.bfloat16),                              # ctx
            ]),
        compiler_params=pltpu.CompilerParams(
            dimension_semantics=("parallel", "parallel", "arbitrary"),
            vmem_limit_bytes=_vmem_limit(attn_bytes)),
    )(q, k, v, wo, bo)


# ---------------------------------------------------------------------------
# Pure-JAX reference mirroring the PyTorch forward (floor-divided logits).
# ---------------------------------------------------------------------------
def _reference(x, params, *, num_heads, num_kv_heads):
    B, S, H = x.shape
    hd = H // num_heads
    group = num_heads // num_kv_heads
    inv_scale = 1.0 / math.sqrt(hd)

    q = x @ params["wq"] + params["bq"][0]
    k = x @ params["wk"] + params["bk"][0]
    v = x @ params["wv"] + params["bv"][0]

    q = q.reshape(B, S, num_heads, hd).transpose(0, 2, 1, 3)
    k = k.reshape(B, S, num_kv_heads, hd).transpose(0, 2, 1, 3)
    v = v.reshape(B, S, num_kv_heads, hd).transpose(0, 2, 1, 3)
    k = jnp.repeat(k, group, axis=1)
    v = jnp.repeat(v, group, axis=1)

    scores = jnp.floor(jnp.einsum("bhqd,bhkd->bhqk", q, k) * inv_scale)
    w = jax.nn.softmax(scores, axis=-1)
    out = jnp.einsum("bhqk,bhkd->bhqd", w, v)
    out = out.transpose(0, 2, 1, 3).reshape(B, S, H)
    return out @ params["wo"] + params["bo"][0]


if __name__ == "__main__":
    batch, seq, hidden = 2, 8, 32
    num_heads, num_kv_heads = 4, 2
    head_dim = hidden // num_heads
    kv_dim = num_kv_heads * head_dim

    key = jax.random.PRNGKey(0)
    keys = jax.random.split(key, 9)
    scale = 0.1

    # Weights stored as [in_features, out_features] (torch W.T), biases [1, out].
    params = {
        "wq": scale * jax.random.normal(keys[0], (hidden, hidden), jnp.float32),
        "bq": scale * jax.random.normal(keys[1], (1, hidden), jnp.float32),
        "wk": scale * jax.random.normal(keys[2], (hidden, kv_dim), jnp.float32),
        "bk": scale * jax.random.normal(keys[3], (1, kv_dim), jnp.float32),
        "wv": scale * jax.random.normal(keys[4], (hidden, kv_dim), jnp.float32),
        "bv": scale * jax.random.normal(keys[5], (1, kv_dim), jnp.float32),
        "wo": scale * jax.random.normal(keys[6], (hidden, hidden), jnp.float32),
        "bo": scale * jax.random.normal(keys[7], (1, hidden), jnp.float32),
    }
    x = jax.random.normal(keys[8], (batch, seq, hidden), jnp.float32)

    out = gqa_forward(x, params, num_heads=num_heads, num_kv_heads=num_kv_heads)
    out = jax.block_until_ready(out)

    ref = _reference(x, params, num_heads=num_heads, num_kv_heads=num_kv_heads)
    assert out.shape == (batch, seq, hidden)
    # Tolerance covers the bf16 V / P@V / Wo paths and the approx reciprocal.
    assert jnp.allclose(out, ref, atol=1e-2, rtol=1e-2), "mismatch vs reference"

    print("KERNEL_OK")
</pallas_src>

<mosaic_0001>
module attributes {stable_mosaic.version = 11 : i64} {
  func.func @_qkv_proj_kernel(%arg0: i32, %arg1: i32, %arg2: memref<1x8x32xf32, #tpu.memory_space<vmem>>, %arg3: memref<32x32xf32, #tpu.memory_space<vmem>>, %arg4: memref<1x32xf32, #tpu.memory_space<vmem>>, %arg5: memref<32x16xf32, #tpu.memory_space<vmem>>, %arg6: memref<1x16xf32, #tpu.memory_space<vmem>>, %arg7: memref<32x16xbf16, #tpu.memory_space<vmem>>, %arg8: memref<1x16xf32, #tpu.memory_space<vmem>>, %arg9: memref<1x8x32xf32, #tpu.memory_space<vmem>>, %arg10: memref<1x8x16xf32, #tpu.memory_space<vmem>>, %arg11: memref<1x8x16xbf16, #tpu.memory_space<vmem>>) attributes {dimension_semantics = [#tpu.dimension_semantics<parallel>, #tpu.dimension_semantics<parallel>], iteration_bounds = array<i64: 2, 1>, scalar_prefetch = 0 : i64, scratch_operands = 0 : i64, tpu.core_type = #tpu.core_type<tc>, window_params = [{transform_indices = @transform_0, window_bounds = array<i64: 1, 8, 32>}, {pipeline_mode = #tpu.pipeline_mode<synchronous>, transform_indices = @transform_1, window_bounds = array<i64: 32, 32>}, {pipeline_mode = #tpu.pipeline_mode<synchronous>, transform_indices = @transform_2, window_bounds = array<i64: 1, 32>}, {pipeline_mode = #tpu.pipeline_mode<synchronous>, transform_indices = @transform_3, window_bounds = array<i64: 32, 16>}, {pipeline_mode = #tpu.pipeline_mode<synchronous>, transform_indices = @transform_4, window_bounds = array<i64: 1, 16>}, {pipeline_mode = #tpu.pipeline_mode<synchronous>, transform_indices = @transform_5, window_bounds = array<i64: 32, 16>}, {pipeline_mode = #tpu.pipeline_mode<synchronous>, transform_indices = @transform_6, window_bounds = array<i64: 1, 16>}, {transform_indices = @transform_7, window_bounds = array<i64: 1, 8, 32>}, {transform_indices = @transform_8, window_bounds = array<i64: 1, 8, 16>}, {transform_indices = @transform_9, window_bounds = array<i64: 1, 8, 16>}]} {
    %c0 = arith.constant 0 : index
    %c0_0 = arith.constant 0 : index
    %c0_1 = arith.constant 0 : index
    %0 = vector.load %arg2[%c0, %c0_0, %c0_1] : memref<1x8x32xf32, #tpu.memory_space<vmem>>, vector<1x8x32xf32>
    %1 = vector.shape_cast %0 : vector<1x8x32xf32> to vector<8x32xf32>
    %c0_2 = arith.constant 0 : index
    %c0_3 = arith.constant 0 : index
    %2 = vector.load %arg3[%c0_2, %c0_3] : memref<32x32xf32, #tpu.memory_space<vmem>>, vector<32x32xf32>
    %cst = arith.constant dense<0.000000e+00> : vector<8x32xf32>
    %3 = tpu.matmul %1, %2, %cst {dimension_numbers = #tpu.dot_dimension_numbers<[1], [0], [0], [1], [0, 0, 1, 1], [], []>} : vector<8x32xf32>, vector<32x32xf32>, vector<8x32xf32> -> vector<8x32xf32>
    %c0_4 = arith.constant 0 : index
    %c0_5 = arith.constant 0 : index
    %4 = vector.load %arg4[%c0_4, %c0_5] : memref<1x32xf32, #tpu.memory_space<vmem>>, vector<1x32xf32>
    %5 = vector.broadcast %4 : vector<1x32xf32> to vector<8x32xf32>
    %6 = arith.addf %3, %5 : vector<8x32xf32>
    %c0_6 = arith.constant 0 : index
    %c0_7 = arith.constant 0 : index
    %c0_8 = arith.constant 0 : index
    %7 = vector.load %arg9[%c0_6, %c0_7, %c0_8] : memref<1x8x32xf32, #tpu.memory_space<vmem>>, vector<1x8x32xf32>
    %8 = vector.shape_cast %7 : vector<1x8x32xf32> to vector<8x32xf32>
    %9 = vector.shape_cast %6 : vector<8x32xf32> to vector<1x8x32xf32>
    tpu.vector_store %arg9[%c0_6, %c0_7, %c0_8], %9 {strides = array<i32>} : memref<1x8x32xf32, #tpu.memory_space<vmem>>, vector<1x8x32xf32>,
    %c0_9 = arith.constant 0 : index
    %c0_10 = arith.constant 0 : index
    %10 = vector.load %arg5[%c0_9, %c0_10] : memref<32x16xf32, #tpu.memory_space<vmem>>, vector<32x16xf32>
    %cst_11 = arith.constant dense<0.000000e+00> : vector<8x16xf32>
    %11 = tpu.matmul %1, %10, %cst_11 {dimension_numbers = #tpu.dot_dimension_numbers<[1], [0], [0], [1], [0, 0, 1, 1], [], []>} : vector<8x32xf32>, vector<32x16xf32>, vector<8x16xf32> -> vector<8x16xf32>
    %c0_12 = arith.constant 0 : index
    %c0_13 = arith.constant 0 : index
    %12 = vector.load %arg6[%c0_12, %c0_13] : memref<1x16xf32, #tpu.memory_space<vmem>>, vector<1x16xf32>
    %13 = vector.broadcast %12 : vector<1x16xf32> to vector<8x16xf32>
    %14 = arith.addf %11, %13 : vector<8x16xf32>
    %c0_14 = arith.constant 0 : index
    %c0_15 = arith.constant 0 : index
    %c0_16 = arith.constant 0 : index
    %15 = vector.load %arg10[%c0_14, %c0_15, %c0_16] : memref<1x8x16xf32, #tpu.memory_space<vmem>>, vector<1x8x16xf32>
    %16 = vector.shape_cast %15 : vector<1x8x16xf32> to vector<8x16xf32>
    %17 = vector.shape_cast %14 : vector<8x16xf32> to vector<1x8x16xf32>
    tpu.vector_store %arg10[%c0_14, %c0_15, %c0_16], %17 {strides = array<i32>} : memref<1x8x16xf32, #tpu.memory_space<vmem>>, vector<1x8x16xf32>,
    %18 = arith.truncf %1 : vector<8x32xf32> to vector<8x32xbf16>
    %c0_17 = arith.constant 0 : index
    %c0_18 = arith.constant 0 : index
    %19 = vector.load %arg7[%c0_17, %c0_18] : memref<32x16xbf16, #tpu.memory_space<vmem>>, vector<32x16xbf16>
    %cst_19 = arith.constant dense<0.000000e+00> : vector<8x16xf32>
    %20 = tpu.matmul %18, %19, %cst_19 {dimension_numbers = #tpu.dot_dimension_numbers<[1], [0], [0], [1], [0, 0, 1, 1], [], []>} : vector<8x32xbf16>, vector<32x16xbf16>, vector<8x16xf32> -> vector<8x16xf32>
    %c0_20 = arith.constant 0 : index
    %c0_21 = arith.constant 0 : index
    %21 = vector.load %arg8[%c0_20, %c0_21] : memref<1x16xf32, #tpu.memory_space<vmem>>, vector<1x16xf32>
    %22 = vector.broadcast %21 : vector<1x16xf32> to vector<8x16xf32>
    %23 = arith.addf %20, %22 : vector<8x16xf32>
    %24 = arith.truncf %23 : vector<8x16xf32> to vector<8x16xbf16>
    %c0_22 = arith.constant 0 : index
    %c0_23 = arith.constant 0 : index
    %c0_24 = arith.constant 0 : index
    %25 = vector.load %arg11[%c0_22, %c0_23, %c0_24] : memref<1x8x16xbf16, #tpu.memory_space<vmem>>, vector<1x8x16xbf16>
    %26 = vector.shape_cast %25 : vector<1x8x16xbf16> to vector<8x16xbf16>
    %27 = vector.shape_cast %24 : vector<8x16xbf16> to vector<1x8x16xbf16>
    tpu.vector_store %arg11[%c0_22, %c0_23, %c0_24], %27 {strides = array<i32>} : memref<1x8x16xbf16, #tpu.memory_space<vmem>>, vector<1x8x16xbf16>,
    return
  }
  func.func @transform_0(%arg0: i32, %arg1: i32) -> (i32, i32, i32) {
    %c0_i32 = arith.constant 0 : i32
    %c0_i32_0 = arith.constant 0 : i32
    return %arg0, %arg1, %c0_i32 : i32, i32, i32
  }
  func.func @transform_1(%arg0: i32, %arg1: i32) -> (i32, i32) {
    %c0_i32 = arith.constant 0 : i32
    %c0_i32_0 = arith.constant 0 : i32
    %c0_i32_1 = arith.constant 0 : i32
    return %c0_i32, %c0_i32_0 : i32, i32
  }
  func.func @transform_2(%arg0: i32, %arg1: i32) -> (i32, i32) {
    %c0_i32 = arith.constant 0 : i32
    %c0_i32_0 = arith.constant 0 : i32
    %c0_i32_1 = arith.constant 0 : i32
    return %c0_i32, %c0_i32_0 : i32, i32
  }
  func.func @transform_3(%arg0: i32, %arg1: i32) -> (i32, i32) {
    %c0_i32 = arith.constant 0 : i32
    %c0_i32_0 = arith.constant 0 : i32
    %c0_i32_1 = arith.constant 0 : i32
    return %c0_i32, %c0_i32_0 : i32, i32
  }
  func.func @transform_4(%arg0: i32, %arg1: i32) -> (i32, i32) {
    %c0_i32 = arith.constant 0 : i32
    %c0_i32_0 = arith.constant 0 : i32
    %c0_i32_1 = arith.constant 0 : i32
    return %c0_i32, %c0_i32_0 : i32, i32
  }
  func.func @transform_5(%arg0: i32, %arg1: i32) -> (i32, i32) {
    %c0_i32 = arith.constant 0 : i32
    %c0_i32_0 = arith.constant 0 : i32
    %c0_i32_1 = arith.constant 0 : i32
    return %c0_i32, %c0_i32_0 : i32, i32
  }
  func.func @transform_6(%arg0: i32, %arg1: i32) -> (i32, i32) {
    %c0_i32 = arith.constant 0 : i32
    %c0_i32_0 = arith.constant 0 : i32
    %c0_i32_1 = arith.constant 0 : i32
    return %c0_i32, %c0_i32_0 : i32, i32
  }
  func.func @transform_7(%arg0: i32, %arg1: i32) -> (i32, i32, i32) {
    %c0_i32 = arith.constant 0 : i32
    %c0_i32_0 = arith.constant 0 : i32
    return %arg0, %arg1, %c0_i32 : i32, i32, i32
  }
  func.func @transform_8(%arg0: i32, %arg1: i32) -> (i32, i32, i32) {
    %c0_i32 = arith.constant 0 : i32
    %c0_i32_0 = arith.constant 0 : i32
    return %arg0, %arg1, %c0_i32 : i32, i32, i32
  }
  func.func @transform_9(%arg0: i32, %arg1: i32) -> (i32, i32, i32) {
    %c0_i32 = arith.constant 0 : i32
    %c0_i32_0 = arith.constant 0 : i32
    return %arg0, %arg1, %c0_i32 : i32, i32, i32
  }
}

</mosaic_0001>

<bundles_post_ra>
// kernel: tpu_custom_call.1
= control target key start
LH: loop header
LB: loop body
LE: loop exit
PB: predicated region body
PF: predicated region fallthrough
CT: control target
= control target key end

     0   :  { %s1395_s0 = inlined_call_operand.vmem [shape: f32[2,8,32], index: 0, kind: input, shape index: {}]   ;;  %s1396_s1 = inlined_call_operand.vmem [shape: f32[32,32], index: 1, kind: input, shape index: {}]   ;;  %s1397_s2 = inlined_call_operand.vmem [shape: f32[1,32], index: 2, kind: input, shape index: {}]   ;;  %s1398_s3 = inlined_call_operand.vmem [shape: f32[32,16], index: 3, kind: input, shape index: {}]   ;;  %s1399_s4 = inlined_call_operand.vmem [shape: f32[1,16], index: 4, kind: input, shape index: {}]   ;;  %s1400_s5 = inlined_call_operand.vmem [shape: bf16[32,16], index: 5, kind: input, shape index: {}]   ;;  %s1401_s6 = inlined_call_operand.vmem [shape: f32[1,16], index: 6, kind: input, shape index: {}]   ;;  %s1402_s7 = inlined_call_operand.hbm [shape: f32[2,8,32], index: 7, kind: output, shape index: {0}]   ;;  %s1403_s8 = inlined_call_operand.hbm [shape: f32[2,8,16], index: 8, kind: output, shape index: {1}]   ;;  %s1404_s9 = inlined_call_operand.hbm [shape: bf16[2,8,16], index: 9, kind: output, shape index: {2}]  }
   0x1   :  { %1409 = sst [smem:[#allocation9_spill]] %s1395_s0 }
   0x2   :  { %1410 = sst [smem:[#allocation10_spill]] %s1396_s1 }
   0x3   :  { %1411 = sst [smem:[#allocation11_spill]] %s1397_s2 }
   0x4   :  { %1412 = sst [smem:[#allocation12_spill]] %s1398_s3 }
   0x5   :  { %15 = vsyncpa [#allocation3], 0 }
   0x6   :  { %17 = vsyncpa [#allocation3 + $0x1], 0 }
   0x7   :  { %18 = vsyncpa [#allocation5], 0 }
   0x8   :  { %20 = vsyncpa [#allocation5 + $0x1], 0  ;;  %s1149_s30 = smov 0   ;;  %s1151_s10 = smov 0  }
   0x9   :  { %s1153_s11 = smov 0   ;;  %s1155_s12 = smov 0  }
   0xa   :  { %s1157_s13 = smov 0   ;;  %s1159_s14 = smov 0  }
   0xb LB: > { %s1406_s15 = sadd.s32 4294967295, %s1091_s14   ;;  %s1405_s16 = sadd.s32 4294967294, %s1091_s14   ;;  %s1091_s14 = sphi %s1159_s14, %s26_s14   ;;  %s1087_s13 = sphi %s1157_s13, %s1428_s13   ;;  %s1083_s12 = sphi %s1155_s12, %s1427_s12   ;;  %s1079_s11 = sphi %s1153_s11, %s1426_s11   ;;  %s1075_s10 = sphi %s1151_s10, %s1425_s10   ;;  %s1071_s30 = sphi %s1149_s30, %s1424_s30  }
   0xc   : > { %s38_s17 = sadd.s32 1, %s1087_s13  ;;  %s201_s18 = sadd.s32 1, %s1079_s11 }
   0xd   : > { %p40_p0 = scmp.ge.s32.totalorder %s38_s17, 2  ;;  %p211_p1 = scmp.ne.s32.totalorder %s1079_s11, %s1075_s10 }
   0xe   : > { %p212_p2 = scmp.eq.s32.totalorder %s1406_s15, 1  ;;  %p217_p3 = scmp.ne.s32.totalorder %s1075_s10, %s1071_s30 }
   0xf   : > { %s1430_s17 = smov (%p40_p0, %s38_s17), 0  ;;  %p218_p5 = scmp.eq.s32.totalorder %s1405_s16, 1 }
  0x10   : > { %p1191_p4 = por %p212_p2, %p211_p1  ;;  %s196_s20 = ssub.s32 %s1087_s13, %s1430_s17 }
  0x11   : > { %p807_p6 = scmp.ge.s32.totalorder %s1091_s14, 1  ;;  %p199_p7 = scmp.eq.s32.totalorder %s196_s20, 0 }
  0x12   : > { %p1200_p8 = por %p218_p5, %p217_p3  ;;  %p320_p9 = scmp.lt.s32.totalorder %s1091_s14, 3 }
  0x13   : > { %s1206_s22 = scalar_select %p199_p7, %s1079_s11, %s201_s18  }
  0x14   : > { %p321_p10 = pnand %p807_p6, %p320_p9 }
  0x15   : > { %s1415_s1 = sld [smem:[#allocation10_spill]] (!%p321_p10)  ;;  %v1093_v3 = vmov (!%p321_p10), 0.0|0.0   ;;  %v1094_v5 = vmov (!%p321_p10), 0.0   ;;  %p368_p11 = scmp.lt.s32.totalorder (!%p321_p10), %s1083_s12, 1  ;;  %v951_v7 = vld [vmem:[%s1400_s5] sm:$0xff] (!%p321_p10)   ;;  %vm1095_vm0 = vmmov (!%p321_p10), 0  }
  0x16   : > { %324 = sbr.rel (%p321_p10) target bundleno = 316 (0x13c), region = 48  ;;  %871 = vmatprep.subr.bf16.mxu1 (!%p321_p10), %v1093_v3  ;;  %863 = vmatprep.subr.bf16.mxu0 (!%p321_p10), %v1094_v5  ;;  %s1416_s3 = sld [smem:[#allocation12_spill]] (!%p321_p10)  ;;  %v952_v11 = vld [vmem:[%s1400_s5 + $0x8] sm:$0xff] (!%p321_p10)   ;;  %vm388_vm1 = vcmask (!%p321_p10), 261120   ;;  %v816_v19 = vld [vmem:[%s1401_s6] ss:$0 sm:$0xff] (!%p321_p10) }
  0x17   : > { %849 = vmatprep.mubr.msk.f32.mxu1 (!%p321_p10), %vm1095_vm0, %v1094_v5  ;;  %867 = vmatprep.mubr.msk.bf16.mxu0 (!%p321_p10), %vm1095_vm0, %v1094_v5  ;;  %s1417_s0 = sld [smem:[#allocation9_spill]] (!%p321_p10)  ;;  %s1418_s2 = sld [smem:[#allocation11_spill]] (!%p321_p10)  ;;  %vm614_vm2 = vcmask (!%p321_p10), 125952  }
  0x18   : > { %864 = vmatpush3.bf16.msra.mxu0 (!%p321_p10), %v951_v7  ;;  %s1407_s18 = sshll.u32 (!%p321_p10), %s1083_s12, 7 }
  0x19   : > { %865 = vmatprep.subr.bf16.mxu0 (!%p321_p10), %v1094_v5  ;;  %s1268_s28 = scalar_lea.hbm (!%p321_p10), %s1402_s7, %s1407_s18 }
  0x1b   : > { %v377_v0 = vld [vmem:[%s1415_s1] sm:$0xff] (!%p321_p10)  ;;  %v378_v1 = vld [vmem:[%s1415_s1 + $0x8] sm:$0xff] (!%p321_p10)  ;;  %v379_v2 = vld [vmem:[%s1415_s1 + $0x10] sm:$0xff] (!%p321_p10) }
  0x1c   : > { %v872_v4 = vpack.c.bf16 (!%p321_p10), %v378_v1, %v377_v0  ;;  %v380_v6 = vld [vmem:[%s1415_s1 + $0x18] sm:$0xff] (!%p321_p10)  ;;  %v463_v9 = vld [vmem:[%s1416_s3] sm:$0xff] (!%p321_p10)  ;;  %v464_v10 = vld [vmem:[%s1416_s3 + $0x8] sm:$0xff] (!%p321_p10)  ;;  %866 = vmatpush3.bf16.msra.mxu0 (!%p321_p10), %v952_v11 }
  0x1d   : > { %v875_v8 = vpack.c.bf16 %v380_v6, %v379_v2  ;;  %s369_s24 = scalar_select %p368_p11, %s1083_s12, 1  ;;  %v878_v13 = vpack.c.bf16 %v464_v10, %v463_v9  ;;  %v465_v15 = vld [vmem:[%s1416_s3 + $0x10] sm:$0xff]  ;;  %v466_v16 = vld [vmem:[%s1416_s3 + $0x18] sm:$0xff]  ;;  %v812_v18 = vld [vmem:[%s1418_s2] ss:$0 sm:$0xff] }
  0x1e   : > { %873 = vmatpush3.bf16.msra.mxu1 %v872_v4  ;;  %v881_v17 = vpack.c.bf16 %v466_v16, %v465_v15 }
  0x1f   : > { %874 = vmatprep.subr.bf16.mxu1 %v1093_v3  ;;  %s811_s20 = sshll.u32 %s369_s24, 3 }
  0x20   : > { %s374_s15 = scalar_lea.vmem %s1417_s0, %s811_s20  ;;  %s1096_s0 = smov [#allocation2]  }
  0x21   : > { %v376_v12 = vld [vmem:[%s374_s15] sm:$0xff]  ;;  %s1250_s15 = sand.u32 1, %s1075_s10   ;;  %s957_s26 = sshll.u32 %s1096_s0, 4  ;;  %s958_s26 = int_to_ptr.vmem [resolvable:$false] %s957_s26 }
  0x22   : > { %876 = vmatpush3.bf16.msra.mxu1 %v875_v8  ;;  %v546_v14 = vpack.c.bf16 %v376_v12, %v376_v12  ;;  %s1408_s16 = sshll.u32 %s1250_s15, 3  ;;  %s617_s29 = scalar_lea.sflag [#allocation3], %s1250_s15 }
  0x23   : > { %877 = vmatprep.subr.bf16.mxu1 %v1093_v3  ;;  %s353_s20 = scalar_lea.vmem [#allocation2], %s1408_s16  ;;  %s959_s24 = scalar_lea.vmem %s958_s26, 256 }
  0x24   : > { %868 = vmatmul.mubr.msk.bf16.vlgmr.msra.gmra.mrb[0].mxu0 %vm388_vm1, %v546_v14  ;;  %s641_s23 = sshll.u32 %s353_s20, 4  ;;  %s1270_s23 = int_to_ptr.vmem [resolvable:$true] %s641_s23 }
  0x25   : > { %850 = vmatmul.mubr.msk.f32.vlgmr.msra.gmra.mrb[0].mxu1 %vm388_vm1, %v376_v12  ;;  %s953_s25 = scalar_lea.vmem %s1270_s23, 128  ;;  %p960_p1 = scmp.lt.s32.totalorder %s1270_s23, %s958_s26 }
  0x26   : > { %879 = vmatpush3.bf16.msra.mxu1 %v878_v13  ;;  %860 = vmatprep.mubr.msk.f32.mxu1 %vm1095_vm0, %v1094_v5  ;;  %p954_p12 = scmp.ne.s32.totalorder %s1270_s23, %s953_s25  ;;  %p961_p2 = scmp.lt.s32.totalorder %s959_s24, %s953_s25 }
  0x27   : > { %880 = vmatprep.subr.bf16.mxu1 %v1093_v3 }
  0x28   : > { %p955_p13 = pnand %p954_p12, %p1191_p4  ;;  %p962_p3 = por %p961_p2, %p960_p1 }
  0x2a   : > { %882 = vmatpush3.bf16.msra.mxu1 %v881_v17  ;;  %p956_p0 = pneg %p955_p13 }
  0x2c   : > { %p963_p5 = pnand %p962_p3, %p956_p0 }
  0x2d   : > { %861 = vmatmul.mubr.msk.f32.vlgmr.msra.gmra.mrb[2].mxu1 %vm388_vm1, %v376_v12 }
  0xf7   : > { %v607_v23 = vpop.f32.mrb[0].mxu0 }
  0xf8   : > { %v458_v20 = vpop.f32.mrb[0].mxu1  ;;  %v608_v24 = vadd.f32 %v816_v19, %v607_v23  ;;  %v869_v25 = vpop.f32.mrb[1].mxu0 }
  0xf9   : > { %v459_v21 = vadd.f32 %v812_v18, %v458_v20  ;;  %v851_v22 = vpop.f32.mrb[1].mxu1  ;;  %v610_v26 = vpop.f32.mrb[2].mxu0 }
  0xfa   : > { %v613_v27 = vpack.c.bf16 %v608_v24, %v608_v24  ;;  %v870_v28 = vpop.f32.mrb[3].mxu0 }
  0xfb   : > { %462 = vst.msk [vmem:[%s353_s20] sm:$0xff] %vm388_vm1, %v459_v21 }
  0xfc   : > { %966 = shalt.err (!%p963_p5)
}
  0xfd   : > { %s967_s20 = scalar_lea.hbm %s1268_s28, 128  ;;  %s971_s0 = scalar_lea.hbm %s1402_s7, 256 }
  0xfe   : > { %p968_p6 = scmp.ne.s32.totalorder %s1268_s28, %s967_s20  ;;  %p972_p10 = scmp.lt.u32.totalorder %s1268_s28, %s1402_s7 }
  0xff   : > { %p973_p11 = scmp.lt.u32.totalorder %s971_s0, %s967_s20  ;;  %p975_p13 = scmp.lt.u32.totalorder %s967_s20, %s1268_s28 }
 0x100   : > { %p969_p7 = pnand %p968_p6, %p1191_p4 }
 0x101   : > { %p974_p12 = por %p973_p11, %p972_p10 }
 0x102   : > { %p970_p9 = pneg %p969_p7 }
 0x103   : > { %p976_p0 = por %p975_p13, %p974_p12 }
 0x105   : > { %p977_p1 = pnand %p976_p0, %p970_p9 }
 0x107   : > { %980 = shalt.err (!%p977_p1)
}
 0x108   : > { %883 = dma.vmem_to_hbm [thread:$0]  (%p1191_p4), %s1270_s23, 128, %s1268_s28, %s617_s29   ;;  %v814_v29 = vld [vmem:[%s1399_s4] ss:$0 sm:$0xff]  ;;  %v540_v30 = vpop.f32.mrb[2].mxu1  ;;  %vm544_vm3 = vcmask 130048  }
 0x109   : > { %s1419_s16 = sadd.s32 4294967295, %s1091_s14   ;;  %s1420_s27 = sshll.u32 %s1250_s15, 2  ;;  %v541_v31 = vadd.f32 %v814_v29, %v540_v30  ;;  %v862_v32 = vpop.f32.mrb[3].mxu1 }
 0x10a   : > { %s1297_s18 = sand.u32 1, %s1419_s16   ;;  %s367_s25 = scalar_lea.vmem [#allocation6], %s1420_s27 }
 0x10b   : > { %615 = vst.msk [vmem:[%s367_s25] sm:$0xf] %vm614_vm2, %v613_v27  ;;  %s1421_s0 = sshll.u32 %s1250_s15, 3  ;;  %s825_s2 = sshll.u32 %s1083_s12, 6 }
 0x10c   : > { %s360_s26 = scalar_lea.vmem [#allocation4], %s1421_s0  ;;  %s669_s3 = sshll.u32 %s367_s25, 4  ;;  %s1322_s3 = int_to_ptr.vmem [resolvable:$true] %s669_s3 }
 0x10d   : > { %s655_s1 = sshll.u32 %s360_s26, 4  ;;  %s1422_s23 = sshll.u32 %s1083_s12, 7  ;;  %545 = vst.msk [vmem:[%s360_s26] sm:$0xff] %vm544_vm3, %v541_v31  ;;  %s1315_s1 = int_to_ptr.vmem [resolvable:$true] %s655_s1 }
 0x10e   : > { %s1313_s16 = scalar_lea.hbm %s1403_s8, %s1422_s23  ;;  %s1320_s15 = scalar_lea.hbm %s1404_s9, %s825_s2 }
 0x10f   : > { %s622_s25 = scalar_lea.sflag [#allocation5], %s1297_s18  ;;  %s981_s12 = scalar_lea.vmem %s1315_s1, 128 }
 0x110   : > { %p982_p2 = scmp.ne.s32.totalorder %s1315_s1, %s981_s12  ;;  %s1097_s20 = smov [#allocation4]  }
 0x111   : > { %s985_s0 = sshll.u32 %s1097_s20, 4  ;;  %s986_s0 = int_to_ptr.vmem [resolvable:$false] %s985_s0 }
 0x112   : > { %p983_p3 = pnand %p982_p2, %p1191_p4  ;;  %s987_s23 = scalar_lea.vmem %s986_s0, 256 }
 0x113   : > { %p988_p6 = scmp.lt.s32.totalorder %s1315_s1, %s986_s0  ;;  %p989_p7 = scmp.lt.s32.totalorder %s987_s23, %s981_s12 }
 0x114   : > { %p984_p5 = pneg %p983_p3 }
 0x115   : > { %p990_p9 = por %p989_p7, %p988_p6 }
 0x117   : > { %p991_p10 = pnand %p990_p9, %p984_p5 }
 0x119   : > { %994 = shalt.err (!%p991_p10)
}
 0x11a   : > { %s995_s2 = scalar_lea.hbm %s1313_s16, 128  ;;  %s999_s29 = scalar_lea.hbm %s1403_s8, 256 }
 0x11b   : > { %p996_p11 = scmp.ne.s32.totalorder %s1313_s16, %s995_s2  ;;  %p1000_p0 = scmp.lt.u32.totalorder %s1313_s16, %s1403_s8 }
 0x11c   : > { %p1001_p1 = scmp.lt.u32.totalorder %s999_s29, %s995_s2  ;;  %p1003_p3 = scmp.lt.u32.totalorder %s995_s2, %s1313_s16 }
 0x11d   : > { %p997_p12 = pnand %p996_p11, %p1191_p4 }
 0x11e   : > { %p1002_p2 = por %p1001_p1, %p1000_p0 }
 0x11f   : > { %p998_p13 = pneg %p997_p12 }
 0x120   : > { %p1004_p5 = por %p1003_p3, %p1002_p2 }
 0x122   : > { %p1005_p6 = pnand %p1004_p5, %p998_p13 }
 0x124   : > { %1008 = shalt.err (!%p1005_p6)
}
 0x125   : > { %884 = dma.vmem_to_hbm [thread:$0]  (%p1191_p4), %s1315_s1, 128, %s1313_s16, %s622_s25  }
 0x126   : > { %s1009_s12 = scalar_lea.vmem %s1322_s3, 64  ;;  %s1098_s20 = smov [#allocation6]  }
 0x127   : > { %p1010_p7 = scmp.ne.s32.totalorder %s1322_s3, %s1009_s12  ;;  %s1013_s0 = sshll.u32 %s1098_s20, 4  ;;  %s1014_s0 = int_to_ptr.vmem [resolvable:$false] %s1013_s0 }
 0x128   : > { %s1015_s23 = scalar_lea.vmem %s1014_s0, 128  ;;  %p1016_p11 = scmp.lt.s32.totalorder %s1322_s3, %s1014_s0 }
 0x129   : > { %p1011_p9 = pnand %p1010_p7, %p1191_p4  ;;  %p1017_p12 = scmp.lt.s32.totalorder %s1015_s23, %s1009_s12 }
 0x12b   : > { %p1012_p10 = pneg %p1011_p9  ;;  %p1018_p13 = por %p1017_p12, %p1016_p11 }
 0x12d   : > { %p1019_p0 = pnand %p1018_p13, %p1012_p10 }
 0x12f   : > { %1022 = shalt.err (!%p1019_p0)
}
 0x130   : > { %s1023_s1 = scalar_lea.hbm %s1320_s15, 64  ;;  %s1027_s26 = scalar_lea.hbm %s1404_s9, 128 }
 0x131   : > { %p1024_p1 = scmp.ne.s32.totalorder %s1320_s15, %s1023_s1  ;;  %p1028_p5 = scmp.lt.u32.totalorder %s1320_s15, %s1404_s9 }
 0x132   : > { %p1029_p6 = scmp.lt.u32.totalorder %s1027_s26, %s1023_s1  ;;  %p1031_p9 = scmp.lt.u32.totalorder %s1023_s1, %s1320_s15 }
 0x133   : > { %p1025_p2 = pnand %p1024_p1, %p1191_p4 }
 0x134   : > { %p1030_p7 = por %p1029_p6, %p1028_p5 }
 0x135   : > { %p1026_p3 = pneg %p1025_p2 }
 0x136   : > { %p1032_p10 = por %p1031_p9, %p1030_p7 }
 0x138   : > { %p1033_p11 = pnand %p1032_p10, %p1026_p3 }
 0x13a   : > { %1036 = shalt.err (!%p1033_p11)
}
 0x13b   : > { %885 = dma.vmem_to_hbm [thread:$0]  (%p1191_p4), %s1322_s3, 64, %s1320_s15, %s622_s25  }
 0x13c PF: > { %p899_p12 = scmp.ge.s32.totalorder %s1091_s14, 2  ;;  %s681_s27 = sand.u32 1, %s1071_s30  }
 0x13d   : > { %s682_s24 = scalar_lea.sflag [#allocation3], %s681_s27 }
 0x13e   : > { %p890_p13 = pnand %p899_p12, %p1200_p8 }
 0x140   : > { %1062 = dma.done.wait (!%p890_p13), %s682_s24, 128  }
 0x141   : > { %1064 = vsyncadd (!%p890_p13), %s682_s24, 4294967168  ;;  %s1423_s12 = sadd.s32 4294967294, %s1091_s14  }
 0x142   : > { %s690_s20 = sand.u32 1, %s1423_s12  }
 0x143   : > { %s691_s19 = scalar_lea.sflag [#allocation5], %s690_s20 }
 0x144   : > { %1066 = dma.done.wait (!%p890_p13), %s691_s19, 192  }
 0x145   : > { %1068 = vsyncadd (!%p890_p13), %s691_s19, 4294967104  ;;  %s26_s14 = sadd.s32 1, %s1091_s14   ;;  %s1424_s30 = smov %s1075_s10 }
 0x146   : > { %p23_p4 = scmp.ge.s32.totalorder %s26_s14, 4   ;;  %s1425_s10 = smov %s1079_s11 }
 0x147   : > { %s1426_s11 = smov %s1206_s22  ;;  %s1427_s12 = smov %s1087_s13 }
 0x148   : > { %s1428_s13 = smov %s1430_s17  ;;  %25 = sbr.rel (!%p23_p4) target bundleno = 11 (0xb), region = 115 }
 0x14f   :  { %705 = vsyncpa [#allocation3], 1 }
 0x150   :  { %707 = vsyncpa [#allocation3 + $0x1], 1 }
 0x151   :  { %708 = vsyncpa [#allocation5], 1 }
 0x152   :  { %710 = vsyncpa [#allocation5 + $0x1], 1 }

</bundles_post_ra>
